<compile_context>
chip_gen: v7x
topology: tpu7x:2x2x1
jax: 0.10.0
libtpu: 0.0.40
codegen_flags: <defaults>
</compile_context>

<pallas_src>
import numpy as np

import jax
import jax.numpy as jnp
from jax.experimental import pallas as pl
from jax.experimental.pallas import tpu as pltpu


# ----------------------------- trace-time (numpy) resize weights -----------------------------

def bilinear_matrix_np(out_size, in_size):
    """Row-interpolation matrix reproducing F.interpolate(mode='bilinear', align_corners=False)."""
    i = np.arange(out_size, dtype=np.float64)
    src = np.maximum((i + 0.5) * (in_size / out_size) - 0.5, 0.0)
    i0 = np.clip(np.floor(src).astype(np.int64), 0, in_size - 1)
    i1 = np.clip(i0 + 1, 0, in_size - 1)
    lam = (src - i0).astype(np.float32)
    m = np.zeros((out_size, in_size), np.float32)
    m[np.arange(out_size), i0] += (1.0 - lam)
    m[np.arange(out_size), i1] += lam
    return m


def nearest_matrix_np(out_size, in_size):
    """One-hot selection matrix reproducing F.interpolate(mode='nearest')."""
    idx = np.clip(np.floor(np.arange(out_size) * (in_size / out_size)).astype(np.int64),
                  0, in_size - 1)
    m = np.zeros((out_size, in_size), np.float32)
    m[np.arange(out_size), idx] = 1.0
    return m


def _round_up(x, m):
    return ((x + m - 1) // m) * m


def nearest_resize(x, h, w):
    """Gather-based nearest resize (JAX reference only)."""
    h_in, w_in = x.shape[1], x.shape[2]
    ih = jnp.floor(jnp.arange(h) * (h_in / h)).astype(jnp.int32)
    iw = jnp.floor(jnp.arange(w) * (w_in / w)).astype(jnp.int32)
    return x[:, ih][:, :, iw]


# ----------------------------- fused Pallas kernel (all scales, one call) -----------------------------

def _make_fused_kernel(H, W, scale_infos):
    """scale_infos: list of dicts with static h, w, off (lane offset into the shared stage-A
    intermediate), has_gate, thresh."""

    def kernel(stacked_ref, wwT_ref, *rest):
        stats_ref = rest[-1]
        args = rest[:-1]

        # ---- stage A once per batch element: (3H, W) bf16 @ (W, Wsum) bf16 -> (3H, Wsum) f32 ----
        t = jnp.dot(stacked_ref[0], wwT_ref[...], preferred_element_type=jnp.float32)
        t_b = t.astype(jnp.bfloat16)

        prev_fd = None
        rows = []
        a = 0
        for info in scale_infos:
            h, w, off = info["h"], info["w"], info["off"]
            cert_ref, flow_ref, wh_ref = args[a], args[a + 1], args[a + 2]
            a += 3
            if info["has_gate"]:
                nh_ref, nwT_ref = args[a], args[a + 1]
                a += 2

            # ---- stage B: three dense (h,H)@(H,w) matmuls on sublane-aligned channel slices ----
            tc = t_b[:, off:off + w]                     # (3H, w), lane-aligned slice (off % 128 == 0)
            wh = wh_ref[...]                             # (h, H) bf16
            sp = jnp.dot(wh, tc[0:H], preferred_element_type=jnp.float32)        # resized mask
            sg0 = jnp.dot(wh, tc[H:2 * H], preferred_element_type=jnp.float32)   # resized gt flow x
            sg1 = jnp.dot(wh, tc[2 * H:3 * H], preferred_element_type=jnp.float32)  # resized gt flow y

            # ---- flow distance (f32 element-wise) ----
            f = flow_ref[0].astype(jnp.float32)          # (2, h, w)
            dx = f[0] - sg0
            dy = f[1] - sg1
            fd = jnp.sqrt(dx * dx + dy * dy)

            # ---- local-loss gate fused in-kernel, fed by the PREVIOUS scale's in-register fd ----
            # nearest(prev_fd) < thresh == nearest(prev_fd < thresh); the 0/1 mask stays exact
            # through the one-hot bf16 selection matmuls.
            s_prob = sp
            if info["has_gate"]:
                gate_c = jnp.where(prev_fd < info["thresh"], 1.0, 0.0).astype(jnp.bfloat16)
                g = jnp.dot(nh_ref[...], gate_c, preferred_element_type=jnp.float32)
                gate = jnp.dot(g.astype(jnp.bfloat16), nwT_ref[...],
                               preferred_element_type=jnp.float32)
                s_prob = s_prob * gate

            # ---- binary cross entropy with logits (stable, log1p-accurate) ----
            x = cert_ref[0].astype(jnp.float32)
            p = jnp.exp(-jnp.abs(x))
            softplus = jnp.where(p > 1e-5, jnp.log(1.0 + p), p)     # == log1p(p) to f32 accuracy
            bce = jnp.maximum(x, 0.0) - x * s_prob + softplus

            # ---- consolidated reductions: 3 lane reduces -> (h,3) -> single sublane reduce ----
            m = (s_prob > 0.0).astype(jnp.float32)
            cols = jnp.concatenate(
                [jnp.sum(bce, axis=1, keepdims=True),
                 jnp.sum(fd * m, axis=1, keepdims=True),
                 jnp.sum(m, axis=1, keepdims=True)], axis=1)        # (h, 3)
            stat3 = jnp.sum(cols, axis=0, keepdims=True)            # (1, 3)
            rows.append(jnp.concatenate([stat3, jnp.zeros((1, 1), jnp.float32)], axis=1))  # (1, 4)

            prev_fd = fd   # stays on-chip; no HBM round trip between scales

        # Single packed per-batch-element store of all per-scale partials.
        stats_ref[0] = jnp.concatenate(rows, axis=0)                # (S, 4)

    return kernel


# ----------------------------- module wrapper -----------------------------

class HomographyRegressionLossPallas:
    def __init__(self, ce_weight=1.0, local_loss=True, local_dist=4.0, local_largest_scale=8):
        self.ce_weight = ce_weight
        self.local_loss = local_loss
        self.local_dist = local_dist
        self.local_largest_scale = local_largest_scale

    def __call__(self, dense_corresps, batch):
        gt_flow = batch['flow']                                     # (B, H, W, 2)
        mask = batch['mask']                                        # (B, H, W)
        B, H, W = mask.shape
        gt_nchw = jnp.transpose(gt_flow, (0, 3, 1, 2))              # (B, 2, H, W)

        # Stack [mask; gtf_x; gtf_y] once and narrow to bf16 (MXU operand; f32 accumulation).
        stacked = jnp.concatenate([mask[:, None].astype(jnp.float32),
                                   gt_nchw.astype(jnp.float32)], axis=1)     # (B, 3, H, W)
        stacked = stacked.reshape(B, 3 * H, W).astype(jnp.bfloat16)          # (B, 3H, W)

        scales = list(dense_corresps.keys())                        # same iteration order as PyTorch
        infos, certs, flows, whs, nhs, nwTs = [], [], [], [], [], []
        ww_blocks = []
        off = 0
        prev_hw = None
        for scale in scales:
            d = dense_corresps[scale]
            cert = d['dense_certainty'][:, 0].astype(jnp.bfloat16)  # (B, h, w)
            flow = d['dense_flow'].astype(jnp.bfloat16)             # (B, 2, h, w)
            h, w = flow.shape[2], flow.shape[3]

            # Trace-time numpy constants (no per-call jnp weight construction).
            wh = bilinear_matrix_np(h, H)                           # (h, H)
            ww = bilinear_matrix_np(w, W).T                         # (W, w)  pre-transposed
            w_pad = _round_up(w, 128)                               # lane-tile aligned column block
            blk = np.zeros((W, w_pad), np.float32)
            blk[:, :w] = ww
            ww_blocks.append(blk)

            has_gate = (scale <= self.local_largest_scale) and self.local_loss
            info = dict(h=h, w=w, off=off, has_gate=has_gate, thresh=None)
            off += w_pad
            if has_gate:
                if prev_hw is None:
                    raise ValueError(
                        "local loss requires a coarser previous scale (same contract as the "
                        "PyTorch module, whose prev_flow_dist starts as a plain float).")
                hp, wp = prev_hw
                info["thresh"] = float(2.0 / 512.0 * (self.local_dist * scale))
                nhs.append(jnp.asarray(nearest_matrix_np(h, hp), dtype=jnp.bfloat16))
                nwTs.append(jnp.asarray(nearest_matrix_np(w, wp).T, dtype=jnp.bfloat16))
            else:
                nhs.append(None)
                nwTs.append(None)

            certs.append(cert)
            flows.append(flow)
            whs.append(jnp.asarray(wh, dtype=jnp.bfloat16))
            infos.append(info)
            prev_hw = (h, w)

        Wsum = off
        wwT_all = jnp.asarray(np.concatenate(ww_blocks, axis=1), dtype=jnp.bfloat16)  # (W, Wsum)

        # ---- specs + inputs (one fused pallas_call; per-batch "parallel" grid) ----
        in_specs = [
            pl.BlockSpec((1, 3 * H, W), lambda i: (i, 0, 0)),       # stacked (bf16), read once/batch
            pl.BlockSpec((W, Wsum), lambda i: (0, 0)),              # shared stage-A column weights
        ]
        inputs = [stacked, wwT_all]
        for s_i, info in enumerate(infos):
            h, w = info["h"], info["w"]
            in_specs.append(pl.BlockSpec((1, h, w), lambda i: (i, 0, 0)))        # cert (bf16)
            in_specs.append(pl.BlockSpec((1, 2, h, w), lambda i: (i, 0, 0, 0)))  # flow (bf16)
            in_specs.append(pl.BlockSpec((h, H), lambda i: (0, 0)))              # stage-B row weights
            inputs += [certs[s_i], flows[s_i], whs[s_i]]
            if info["has_gate"]:
                hp, wp = infos[s_i - 1]["h"], infos[s_i - 1]["w"]
                in_specs.append(pl.BlockSpec((h, hp), lambda i: (0, 0)))         # nearest row sel
                in_specs.append(pl.BlockSpec((wp, w), lambda i: (0, 0)))         # nearest col sel^T
                inputs += [nhs[s_i], nwTs[s_i]]

        S = len(infos)
        out_shape = jax.ShapeDtypeStruct((B, S, 4), jnp.float32)    # packed [bce, fsum, cnt, pad]
        out_spec = pl.BlockSpec((1, S, 4), lambda i: (i, 0, 0))

        # ---- VMEM budget from the actual fused resident set, capped below physical capacity ----
        per_step = 3 * H * W * 2
        weight_bytes = W * Wsum * 2
        interm = 3 * H * Wsum * (4 + 2)
        for s_i, info in enumerate(infos):
            h, w = info["h"], info["w"]
            per_step += 3 * h * w * 2
            weight_bytes += h * H * 2
            if info["has_gate"]:
                hp, wp = infos[s_i - 1]["h"], infos[s_i - 1]["w"]
                weight_bytes += (h * hp + wp * w) * 2
            interm += 10 * h * w * 4
        vmem_need = 2 * per_step + 2 * weight_bytes + interm + S * 4 * 4 + (4 << 20)
        try:
            cap = pltpu.get_tpu_info().vmem_capacity_bytes
        except Exception:
            cap = 64 << 20            # conservative (v7x physical VMEM per TC)
        vmem_limit = int(min(max(vmem_need, 16 << 20), int(0.8 * cap)))

        kernel = _make_fused_kernel(H, W, infos)
        stats = pl.pallas_call(
            kernel,
            out_shape=out_shape,
            grid=(B,),
            in_specs=in_specs,
            out_specs=out_spec,
            compiler_params=pltpu.CompilerParams(
                dimension_semantics=("parallel",),   # independent batch elements -> megacore split
                vmem_limit_bytes=vmem_limit),
        )(*inputs)

        # ---- combine per-batch, per-scale partials (tiny host-side epilogue) ----
        stats = jnp.sum(stats, axis=0)                              # (S, 4)
        tot = jnp.float32(0.0)
        for s_i, info in enumerate(infos):
            h, w = info["h"], info["w"]
            bce_sum, fsum, cnt = stats[s_i, 0], stats[s_i, 1], stats[s_i, 2]
            ce_loss = bce_sum / jnp.float32(B * h * w)
            # flow_dist[prob > 0].mean(), with the "(flow_dist * 0).mean()" fallback when empty
            flow_loss = jnp.where(cnt > 0, fsum / jnp.maximum(cnt, 1.0), jnp.float32(0.0))
            tot = tot + self.ce_weight * ce_loss + flow_loss
        return tot


# ----------------------------- pure-JAX reference -----------------------------
# Mirrors the kernel's intentional bf16 narrowing (inputs, resize weights, stage-A intermediate);
# dropping the .astype(bfloat16) lines recovers the exact f32 semantics of the PyTorch module.

def reference_loss(dense_corresps, batch, ce_weight=1.0, local_loss=True,
                   local_dist=4.0, local_largest_scale=8):
    gt_flow = batch['flow']
    mask = batch['mask']
    B, H, W = mask.shape
    gt_nchw = jnp.transpose(gt_flow, (0, 3, 1, 2))
    stacked = jnp.concatenate([mask[:, None].astype(jnp.float32), gt_nchw], axis=1)
    stacked = stacked.astype(jnp.bfloat16).astype(jnp.float32)          # mirror kernel narrowing

    tot = 0.0
    prev_fd = None
    for scale, d in dense_corresps.items():
        cert = d['dense_certainty'][:, 0].astype(jnp.bfloat16).astype(jnp.float32)
        flow = d['dense_flow'].astype(jnp.bfloat16).astype(jnp.float32)
        h, w = flow.shape[2], flow.shape[3]
        wh = jnp.asarray(bilinear_matrix_np(h, H)).astype(jnp.bfloat16).astype(jnp.float32)
        wwT = jnp.asarray(bilinear_matrix_np(w, W).T).astype(jnp.bfloat16).astype(jnp.float32)
        t = jnp.einsum('bcHW,Ww->bcHw', stacked, wwT)                   # stage A
        t = t.astype(jnp.bfloat16).astype(jnp.float32)                  # mirror stage-B operand
        r = jnp.einsum('hH,bcHw->bchw', wh, t)                          # stage B
        s_prob = r[:, 0]
        s_gt = r[:, 1:]
        fd = jnp.sqrt(jnp.sum((flow - s_gt) ** 2, axis=1))
        if scale <= local_largest_scale and local_loss:
            thresh = 2.0 / 512.0 * (local_dist * scale)
            gate = (nearest_resize(prev_fd, h, w) < thresh).astype(jnp.float32)
            s_prob = s_prob * gate
        x = cert
        bce = jnp.maximum(x, 0.0) - x * s_prob + jnp.log1p(jnp.exp(-jnp.abs(x)))
        ce_loss = jnp.mean(bce)
        m = (s_prob > 0.0).astype(jnp.float32)
        cnt = jnp.sum(m)
        flow_loss = jnp.where(cnt > 0, jnp.sum(fd * m) / jnp.maximum(cnt, 1.0), 0.0)
        tot = tot + ce_weight * ce_loss + flow_loss
        prev_fd = fd
    return tot


# ----------------------------- example run -----------------------------

if __name__ == "__main__":
    key = jax.random.PRNGKey(0)
    B, H, W = 2, 64, 64
    scales = [16, 8]   # coarse-to-fine; first scale > local_largest_scale, as in DKM

    k_mask, k_gt, k_rest = jax.random.split(key, 3)
    mask = (jax.random.uniform(k_mask, (B, H, W)) > 0.5).astype(jnp.float32)
    gt_flow = 0.2 * jax.random.normal(k_gt, (B, H, W, 2), jnp.float32)

    dense_corresps = {}
    ks = jax.random.split(k_rest, 2 * len(scales))
    for idx, s in enumerate(scales):
        h, w = H // s, W // s
        dense_corresps[s] = {
            'dense_certainty': jax.random.normal(ks[2 * idx], (B, 1, h, w), jnp.float32),
            'dense_flow': 0.2 * jax.random.normal(ks[2 * idx + 1], (B, 2, h, w), jnp.float32),
        }
    batch = {'flow': gt_flow, 'mask': mask}

    loss_mod = HomographyRegressionLossPallas()
    tot = loss_mod(dense_corresps, batch)
    tot = jax.block_until_ready(tot)

    ref = reference_loss(dense_corresps, batch)
    np.testing.assert_allclose(np.asarray(tot), np.asarray(ref), rtol=2e-3, atol=2e-4)
    print("KERNEL_OK")
</pallas_src>

<mosaic_0001>
module attributes {stable_mosaic.version = 11 : i64} {
  func.func @kernel(%arg0: i32, %arg1: memref<1x192x64xbf16, #tpu.memory_space<vmem>>, %arg2: memref<64x256xbf16, #tpu.memory_space<vmem>>, %arg3: memref<1x4x4xbf16, #tpu.memory_space<vmem>>, %arg4: memref<1x2x4x4xbf16, #tpu.memory_space<vmem>>, %arg5: memref<4x64xbf16, #tpu.memory_space<vmem>>, %arg6: memref<1x8x8xbf16, #tpu.memory_space<vmem>>, %arg7: memref<1x2x8x8xbf16, #tpu.memory_space<vmem>>, %arg8: memref<8x64xbf16, #tpu.memory_space<vmem>>, %arg9: memref<8x4xbf16, #tpu.memory_space<vmem>>, %arg10: memref<4x8xbf16, #tpu.memory_space<vmem>>, %arg11: memref<1x2x4xf32, #tpu.memory_space<vmem>>) attributes {dimension_semantics = [#tpu.dimension_semantics<parallel>], iteration_bounds = array<i64: 2>, scalar_prefetch = 0 : i64, scratch_operands = 0 : i64, tpu.core_type = #tpu.core_type<tc>, window_params = [{transform_indices = @transform_0, window_bounds = array<i64: 1, 192, 64>}, {pipeline_mode = #tpu.pipeline_mode<synchronous>, transform_indices = @transform_1, window_bounds = array<i64: 64, 256>}, {transform_indices = @transform_2, window_bounds = array<i64: 1, 4, 4>}, {transform_indices = @transform_3, window_bounds = array<i64: 1, 2, 4, 4>}, {pipeline_mode = #tpu.pipeline_mode<synchronous>, transform_indices = @transform_4, window_bounds = array<i64: 4, 64>}, {transform_indices = @transform_5, window_bounds = array<i64: 1, 8, 8>}, {transform_indices = @transform_6, window_bounds = array<i64: 1, 2, 8, 8>}, {pipeline_mode = #tpu.pipeline_mode<synchronous>, transform_indices = @transform_7, window_bounds = array<i64: 8, 64>}, {pipeline_mode = #tpu.pipeline_mode<synchronous>, transform_indices = @transform_8, window_bounds = array<i64: 8, 4>}, {pipeline_mode = #tpu.pipeline_mode<synchronous>, transform_indices = @transform_9, window_bounds = array<i64: 4, 8>}, {transform_indices = @transform_10, window_bounds = array<i64: 1, 2, 4>}]} {
    %c0 = arith.constant 0 : index
    %c0_0 = arith.constant 0 : index
    %c0_1 = arith.constant 0 : index
    %0 = vector.load %arg1[%c0, %c0_0, %c0_1] : memref<1x192x64xbf16, #tpu.memory_space<vmem>>, vector<1x192x64xbf16>
    %1 = vector.shape_cast %0 : vector<1x192x64xbf16> to vector<192x64xbf16>
    %c0_2 = arith.constant 0 : index
    %c0_3 = arith.constant 0 : index
    %2 = vector.load %arg2[%c0_2, %c0_3] : memref<64x256xbf16, #tpu.memory_space<vmem>>, vector<64x256xbf16>
    %cst = arith.constant dense<0.000000e+00> : vector<192x256xf32>
    %3 = tpu.matmul %1, %2, %cst {dimension_numbers = #tpu.dot_dimension_numbers<[1], [0], [0], [1], [0, 0, 1, 1], [], []>} : vector<192x64xbf16>, vector<64x256xbf16>, vector<192x256xf32> -> vector<192x256xf32>
    %4 = arith.truncf %3 : vector<192x256xf32> to vector<192x256xbf16>
    %5 = vector.extract_strided_slice %4 {offsets = [0, 0], sizes = [192, 4], strides = [1, 1]} : vector<192x256xbf16> to vector<192x4xbf16>
    %c0_4 = arith.constant 0 : index
    %c0_5 = arith.constant 0 : index
    %6 = vector.load %arg5[%c0_4, %c0_5] : memref<4x64xbf16, #tpu.memory_space<vmem>>, vector<4x64xbf16>
    %7 = vector.extract_strided_slice %5 {offsets = [0, 0], sizes = [64, 4], strides = [1, 1]} : vector<192x4xbf16> to vector<64x4xbf16>
    %cst_6 = arith.constant dense<0.000000e+00> : vector<4x4xf32>
    %8 = tpu.matmul %6, %7, %cst_6 {dimension_numbers = #tpu.dot_dimension_numbers<[1], [0], [0], [1], [0, 0, 1, 1], [], []>} : vector<4x64xbf16>, vector<64x4xbf16>, vector<4x4xf32> -> vector<4x4xf32>
    %9 = vector.extract_strided_slice %5 {offsets = [64, 0], sizes = [64, 4], strides = [1, 1]} : vector<192x4xbf16> to vector<64x4xbf16>
    %cst_7 = arith.constant dense<0.000000e+00> : vector<4x4xf32>
    %10 = tpu.matmul %6, %9, %cst_7 {dimension_numbers = #tpu.dot_dimension_numbers<[1], [0], [0], [1], [0, 0, 1, 1], [], []>} : vector<4x64xbf16>, vector<64x4xbf16>, vector<4x4xf32> -> vector<4x4xf32>
    %11 = vector.extract_strided_slice %5 {offsets = [128, 0], sizes = [64, 4], strides = [1, 1]} : vector<192x4xbf16> to vector<64x4xbf16>
    %cst_8 = arith.constant dense<0.000000e+00> : vector<4x4xf32>
    %12 = tpu.matmul %6, %11, %cst_8 {dimension_numbers = #tpu.dot_dimension_numbers<[1], [0], [0], [1], [0, 0, 1, 1], [], []>} : vector<4x64xbf16>, vector<64x4xbf16>, vector<4x4xf32> -> vector<4x4xf32>
    %c0_9 = arith.constant 0 : index
    %c0_10 = arith.constant 0 : index
    %c0_11 = arith.constant 0 : index
    %c0_12 = arith.constant 0 : index
    %13 = vector.load %arg4[%c0_9, %c0_10, %c0_11, %c0_12] : memref<1x2x4x4xbf16, #tpu.memory_space<vmem>>, vector<1x2x4x4xbf16>
    %14 = vector.shape_cast %13 : vector<1x2x4x4xbf16> to vector<2x4x4xbf16>
    %15 = arith.extf %14 : vector<2x4x4xbf16> to vector<2x4x4xf32>
    %16 = vector.extract_strided_slice %15 {offsets = [0, 0, 0], sizes = [1, 4, 4], strides = [1, 1, 1]} : vector<2x4x4xf32> to vector<1x4x4xf32>
    %17 = vector.shape_cast %16 : vector<1x4x4xf32> to vector<4x4xf32>
    %18 = arith.subf %17, %10 : vector<4x4xf32>
    %19 = vector.extract_strided_slice %15 {offsets = [1, 0, 0], sizes = [1, 4, 4], strides = [1, 1, 1]} : vector<2x4x4xf32> to vector<1x4x4xf32>
    %20 = vector.shape_cast %19 : vector<1x4x4xf32> to vector<4x4xf32>
    %21 = arith.subf %20, %12 : vector<4x4xf32>
    %22 = arith.mulf %18, %18 : vector<4x4xf32>
    %23 = arith.mulf %21, %21 : vector<4x4xf32>
    %24 = arith.addf %22, %23 : vector<4x4xf32>
    %25 = math.sqrt %24 : vector<4x4xf32>
    %c0_13 = arith.constant 0 : index
    %c0_14 = arith.constant 0 : index
    %c0_15 = arith.constant 0 : index
    %26 = vector.load %arg3[%c0_13, %c0_14, %c0_15] : memref<1x4x4xbf16, #tpu.memory_space<vmem>>, vector<1x4x4xbf16>
    %27 = vector.shape_cast %26 : vector<1x4x4xbf16> to vector<4x4xbf16>
    %28 = arith.extf %27 : vector<4x4xbf16> to vector<4x4xf32>
    %29 = math.absf %28 : vector<4x4xf32>
    %cst_16 = arith.constant 0.000000e+00 : f32
    %30 = vector.broadcast %cst_16 : f32 to vector<4x4xf32>
    %31 = arith.subf %30, %29 : vector<4x4xf32>
    %32 = math.exp %31 : vector<4x4xf32>
    %cst_17 = arith.constant 9.99999974E-6 : f32
    %33 = vector.broadcast %cst_17 : f32 to vector<4x4xf32>
    %34 = arith.cmpf ogt, %32, %33 : vector<4x4xf32>
    %cst_18 = arith.constant 1.000000e+00 : f32
    %35 = vector.broadcast %cst_18 : f32 to vector<4x4xf32>
    %36 = arith.addf %35, %32 : vector<4x4xf32>
    %37 = math.log %36 : vector<4x4xf32>
    %38 = arith.select %34, %37, %32 : vector<4x4xi1>, vector<4x4xf32>
    %cst_19 = arith.constant 0.000000e+00 : f32
    %39 = vector.broadcast %cst_19 : f32 to vector<4x4xf32>
    %40 = arith.maximumf %28, %39 : vector<4x4xf32>
    %41 = arith.mulf %28, %8 : vector<4x4xf32>
    %42 = arith.subf %40, %41 : vector<4x4xf32>
    %43 = arith.addf %42, %38 : vector<4x4xf32>
    %cst_20 = arith.constant 0.000000e+00 : f32
    %44 = vector.broadcast %cst_20 : f32 to vector<4x4xf32>
    %45 = arith.cmpf ogt, %8, %44 : vector<4x4xf32>
    %46 = arith.extui %45 : vector<4x4xi1> to vector<4x4xi32>
    %47 = arith.sitofp %46 : vector<4x4xi32> to vector<4x4xf32>
    %cst_21 = arith.constant dense<0.000000e+00> : vector<4xf32>
    %48 = vector.multi_reduction <add>, %43, %cst_21 [1] : vector<4x4xf32> to vector<4xf32>
    %49 = vector.shape_cast %48 : vector<4xf32> to vector<4x1xf32>
    %50 = arith.mulf %25, %47 : vector<4x4xf32>
    %cst_22 = arith.constant dense<0.000000e+00> : vector<4xf32>
    %51 = vector.multi_reduction <add>, %50, %cst_22 [1] : vector<4x4xf32> to vector<4xf32>
    %52 = vector.shape_cast %51 : vector<4xf32> to vector<4x1xf32>
    %cst_23 = arith.constant dense<0.000000e+00> : vector<4xf32>
    %53 = vector.multi_reduction <add>, %47, %cst_23 [1] : vector<4x4xf32> to vector<4xf32>
    %54 = vector.shape_cast %53 : vector<4xf32> to vector<4x1xf32>
    %55 = tpu.concatenate %49, %52, %54 in 1 : vector<4x1xf32>, vector<4x1xf32>, vector<4x1xf32> -> vector<4x3xf32>
    %cst_24 = arith.constant dense<0.000000e+00> : vector<3xf32>
    %56 = vector.multi_reduction <add>, %55, %cst_24 [0] : vector<4x3xf32> to vector<3xf32>
    %57 = vector.shape_cast %56 : vector<3xf32> to vector<1x3xf32>
    %cst_25 = arith.constant 0.000000e+00 : f32
    %58 = vector.broadcast %cst_25 : f32 to vector<1x1xf32>
    %59 = tpu.concatenate %57, %58 in 1 : vector<1x3xf32>, vector<1x1xf32> -> vector<1x4xf32>
    %60 = vector.extract_strided_slice %4 {offsets = [0, 128], sizes = [192, 8], strides = [1, 1]} : vector<192x256xbf16> to vector<192x8xbf16>
    %c0_26 = arith.constant 0 : index
    %c0_27 = arith.constant 0 : index
    %61 = vector.load %arg8[%c0_26, %c0_27] : memref<8x64xbf16, #tpu.memory_space<vmem>>, vector<8x64xbf16>
    %62 = vector.extract_strided_slice %60 {offsets = [0, 0], sizes = [64, 8], strides = [1, 1]} : vector<192x8xbf16> to vector<64x8xbf16>
    %cst_28 = arith.constant dense<0.000000e+00> : vector<8x8xf32>
    %63 = tpu.matmul %61, %62, %cst_28 {dimension_numbers = #tpu.dot_dimension_numbers<[1], [0], [0], [1], [0, 0, 1, 1], [], []>} : vector<8x64xbf16>, vector<64x8xbf16>, vector<8x8xf32> -> vector<8x8xf32>
    %64 = vector.extract_strided_slice %60 {offsets = [64, 0], sizes = [64, 8], strides = [1, 1]} : vector<192x8xbf16> to vector<64x8xbf16>
    %cst_29 = arith.constant dense<0.000000e+00> : vector<8x8xf32>
    %65 = tpu.matmul %61, %64, %cst_29 {dimension_numbers = #tpu.dot_dimension_numbers<[1], [0], [0], [1], [0, 0, 1, 1], [], []>} : vector<8x64xbf16>, vector<64x8xbf16>, vector<8x8xf32> -> vector<8x8xf32>
    %66 = vector.extract_strided_slice %60 {offsets = [128, 0], sizes = [64, 8], strides = [1, 1]} : vector<192x8xbf16> to vector<64x8xbf16>
    %cst_30 = arith.constant dense<0.000000e+00> : vector<8x8xf32>
    %67 = tpu.matmul %61, %66, %cst_30 {dimension_numbers = #tpu.dot_dimension_numbers<[1], [0], [0], [1], [0, 0, 1, 1], [], []>} : vector<8x64xbf16>, vector<64x8xbf16>, vector<8x8xf32> -> vector<8x8xf32>
    %c0_31 = arith.constant 0 : index
    %c0_32 = arith.constant 0 : index
    %c0_33 = arith.constant 0 : index
    %c0_34 = arith.constant 0 : index
    %68 = vector.load %arg7[%c0_31, %c0_32, %c0_33, %c0_34] : memref<1x2x8x8xbf16, #tpu.memory_space<vmem>>, vector<1x2x8x8xbf16>
    %69 = vector.shape_cast %68 : vector<1x2x8x8xbf16> to vector<2x8x8xbf16>
    %70 = arith.extf %69 : vector<2x8x8xbf16> to vector<2x8x8xf32>
    %71 = vector.extract_strided_slice %70 {offsets = [0, 0, 0], sizes = [1, 8, 8], strides = [1, 1, 1]} : vector<2x8x8xf32> to vector<1x8x8xf32>
    %72 = vector.shape_cast %71 : vector<1x8x8xf32> to vector<8x8xf32>
    %73 = arith.subf %72, %65 : vector<8x8xf32>
    %74 = vector.extract_strided_slice %70 {offsets = [1, 0, 0], sizes = [1, 8, 8], strides = [1, 1, 1]} : vector<2x8x8xf32> to vector<1x8x8xf32>
    %75 = vector.shape_cast %74 : vector<1x8x8xf32> to vector<8x8xf32>
    %76 = arith.subf %75, %67 : vector<8x8xf32>
    %77 = arith.mulf %73, %73 : vector<8x8xf32>
    %78 = arith.mulf %76, %76 : vector<8x8xf32>
    %79 = arith.addf %77, %78 : vector<8x8xf32>
    %80 = math.sqrt %79 : vector<8x8xf32>
    %cst_35 = arith.constant 1.250000e-01 : f32
    %81 = vector.broadcast %cst_35 : f32 to vector<4x4xf32>
    %82 = arith.cmpf olt, %25, %81 : vector<4x4xf32>
    %cst_36 = arith.constant 1.000000e+00 : f32
    %cst_37 = arith.constant 0.000000e+00 : f32
    %83 = vector.broadcast %cst_36 : f32 to vector<4x4xf32>
    %84 = vector.broadcast %cst_37 : f32 to vector<4x4xf32>
    %85 = arith.select %82, %83, %84 : vector<4x4xi1>, vector<4x4xf32>
    %86 = arith.truncf %85 : vector<4x4xf32> to vector<4x4xbf16>
    %c0_38 = arith.constant 0 : index
    %c0_39 = arith.constant 0 : index
    %87 = vector.load %arg9[%c0_38, %c0_39] : memref<8x4xbf16, #tpu.memory_space<vmem>>, vector<8x4xbf16>
    %cst_40 = arith.constant dense<0.000000e+00> : vector<8x4xf32>
    %88 = tpu.matmul %87, %86, %cst_40 {dimension_numbers = #tpu.dot_dimension_numbers<[1], [0], [0], [1], [0, 0, 1, 1], [], []>} : vector<8x4xbf16>, vector<4x4xbf16>, vector<8x4xf32> -> vector<8x4xf32>
    %89 = arith.truncf %88 : vector<8x4xf32> to vector<8x4xbf16>
    %c0_41 = arith.constant 0 : index
    %c0_42 = arith.constant 0 : index
    %90 = vector.load %arg10[%c0_41, %c0_42] : memref<4x8xbf16, #tpu.memory_space<vmem>>, vector<4x8xbf16>
    %cst_43 = arith.constant dense<0.000000e+00> : vector<8x8xf32>
    %91 = tpu.matmul %89, %90, %cst_43 {dimension_numbers = #tpu.dot_dimension_numbers<[1], [0], [0], [1], [0, 0, 1, 1], [], []>} : vector<8x4xbf16>, vector<4x8xbf16>, vector<8x8xf32> -> vector<8x8xf32>
    %92 = arith.mulf %63, %91 : vector<8x8xf32>
    %c0_44 = arith.constant 0 : index
    %c0_45 = arith.constant 0 : index
    %c0_46 = arith.constant 0 : index
    %93 = vector.load %arg6[%c0_44, %c0_45, %c0_46] : memref<1x8x8xbf16, #tpu.memory_space<vmem>>, vector<1x8x8xbf16>
    %94 = vector.shape_cast %93 : vector<1x8x8xbf16> to vector<8x8xbf16>
    %95 = arith.extf %94 : vector<8x8xbf16> to vector<8x8xf32>
    %96 = math.absf %95 : vector<8x8xf32>
    %cst_47 = arith.constant 0.000000e+00 : f32
    %97 = vector.broadcast %cst_47 : f32 to vector<8x8xf32>
    %98 = arith.subf %97, %96 : vector<8x8xf32>
    %99 = math.exp %98 : vector<8x8xf32>
    %cst_48 = arith.constant 9.99999974E-6 : f32
    %100 = vector.broadcast %cst_48 : f32 to vector<8x8xf32>
    %101 = arith.cmpf ogt, %99, %100 : vector<8x8xf32>
    %cst_49 = arith.constant 1.000000e+00 : f32
    %102 = vector.broadcast %cst_49 : f32 to vector<8x8xf32>
    %103 = arith.addf %102, %99 : vector<8x8xf32>
    %104 = math.log %103 : vector<8x8xf32>
    %105 = arith.select %101, %104, %99 : vector<8x8xi1>, vector<8x8xf32>
    %cst_50 = arith.constant 0.000000e+00 : f32
    %106 = vector.broadcast %cst_50 : f32 to vector<8x8xf32>
    %107 = arith.maximumf %95, %106 : vector<8x8xf32>
    %108 = arith.mulf %95, %92 : vector<8x8xf32>
    %109 = arith.subf %107, %108 : vector<8x8xf32>
    %110 = arith.addf %109, %105 : vector<8x8xf32>
    %cst_51 = arith.constant 0.000000e+00 : f32
    %111 = vector.broadcast %cst_51 : f32 to vector<8x8xf32>
    %112 = arith.cmpf ogt, %92, %111 : vector<8x8xf32>
    %113 = arith.extui %112 : vector<8x8xi1> to vector<8x8xi32>
    %114 = arith.sitofp %113 : vector<8x8xi32> to vector<8x8xf32>
    %cst_52 = arith.constant dense<0.000000e+00> : vector<8xf32>
    %115 = vector.multi_reduction <add>, %110, %cst_52 [1] : vector<8x8xf32> to vector<8xf32>
    %116 = vector.shape_cast %115 : vector<8xf32> to vector<8x1xf32>
    %117 = arith.mulf %80, %114 : vector<8x8xf32>
    %cst_53 = arith.constant dense<0.000000e+00> : vector<8xf32>
    %118 = vector.multi_reduction <add>, %117, %cst_53 [1] : vector<8x8xf32> to vector<8xf32>
    %119 = vector.shape_cast %118 : vector<8xf32> to vector<8x1xf32>
    %cst_54 = arith.constant dense<0.000000e+00> : vector<8xf32>
    %120 = vector.multi_reduction <add>, %114, %cst_54 [1] : vector<8x8xf32> to vector<8xf32>
    %121 = vector.shape_cast %120 : vector<8xf32> to vector<8x1xf32>
    %122 = tpu.concatenate %116, %119, %121 in 1 : vector<8x1xf32>, vector<8x1xf32>, vector<8x1xf32> -> vector<8x3xf32>
    %cst_55 = arith.constant dense<0.000000e+00> : vector<3xf32>
    %123 = vector.multi_reduction <add>, %122, %cst_55 [0] : vector<8x3xf32> to vector<3xf32>
    %124 = vector.shape_cast %123 : vector<3xf32> to vector<1x3xf32>
    %cst_56 = arith.constant 0.000000e+00 : f32
    %125 = vector.broadcast %cst_56 : f32 to vector<1x1xf32>
    %126 = tpu.concatenate %124, %125 in 1 : vector<1x3xf32>, vector<1x1xf32> -> vector<1x4xf32>
    %127 = tpu.concatenate %59, %126 in 0 : vector<1x4xf32>, vector<1x4xf32> -> vector<2x4xf32>
    %c0_57 = arith.constant 0 : index
    %c0_58 = arith.constant 0 : index
    %c0_59 = arith.constant 0 : index
    %128 = vector.load %arg11[%c0_57, %c0_58, %c0_59] : memref<1x2x4xf32, #tpu.memory_space<vmem>>, vector<1x2x4xf32>
    %129 = vector.shape_cast %128 : vector<1x2x4xf32> to vector<2x4xf32>
    %130 = vector.shape_cast %127 : vector<2x4xf32> to vector<1x2x4xf32>
    tpu.vector_store %arg11[%c0_57, %c0_58, %c0_59], %130 {strides = array<i32>} : memref<1x2x4xf32, #tpu.memory_space<vmem>>, vector<1x2x4xf32>,
    return
  }
  func.func @transform_0(%arg0: i32) -> (i32, i32, i32) {
    %c0_i32 = arith.constant 0 : i32
    %c0_i32_0 = arith.constant 0 : i32
    %c0_i32_1 = arith.constant 0 : i32
    return %arg0, %c0_i32, %c0_i32_0 : i32, i32, i32
  }
  func.func @transform_1(%arg0: i32) -> (i32, i32) {
    %c0_i32 = arith.constant 0 : i32
    %c0_i32_0 = arith.constant 0 : i32
    %c0_i32_1 = arith.constant 0 : i32
    return %c0_i32, %c0_i32_0 : i32, i32
  }
  func.func @transform_2(%arg0: i32) -> (i32, i32, i32) {
    %c0_i32 = arith.constant 0 : i32
    %c0_i32_0 = arith.constant 0 : i32
    %c0_i32_1 = arith.constant 0 : i32
    return %arg0, %c0_i32, %c0_i32_0 : i32, i32, i32
  }
  func.func @transform_3(%arg0: i32) -> (i32, i32, i32, i32) {
    %c0_i32 = arith.constant 0 : i32
    %c0_i32_0 = arith.constant 0 : i32
    %c0_i32_1 = arith.constant 0 : i32
    %c0_i32_2 = arith.constant 0 : i32
    return %arg0, %c0_i32, %c0_i32_0, %c0_i32_1 : i32, i32, i32, i32
  }
  func.func @transform_4(%arg0: i32) -> (i32, i32) {
    %c0_i32 = arith.constant 0 : i32
    %c0_i32_0 = arith.constant 0 : i32
    %c0_i32_1 = arith.constant 0 : i32
    return %c0_i32, %c0_i32_0 : i32, i32
  }
  func.func @transform_5(%arg0: i32) -> (i32, i32, i32) {
    %c0_i32 = arith.constant 0 : i32
    %c0_i32_0 = arith.constant 0 : i32
    %c0_i32_1 = arith.constant 0 : i32
    return %arg0, %c0_i32, %c0_i32_0 : i32, i32, i32
  }
  func.func @transform_6(%arg0: i32) -> (i32, i32, i32, i32) {
    %c0_i32 = arith.constant 0 : i32
    %c0_i32_0 = arith.constant 0 : i32
    %c0_i32_1 = arith.constant 0 : i32
    %c0_i32_2 = arith.constant 0 : i32
    return %arg0, %c0_i32, %c0_i32_0, %c0_i32_1 : i32, i32, i32, i32
  }
  func.func @transform_7(%arg0: i32) -> (i32, i32) {
    %c0_i32 = arith.constant 0 : i32
    %c0_i32_0 = arith.constant 0 : i32
    %c0_i32_1 = arith.constant 0 : i32
    return %c0_i32, %c0_i32_0 : i32, i32
  }
  func.func @transform_8(%arg0: i32) -> (i32, i32) {
    %c0_i32 = arith.constant 0 : i32
    %c0_i32_0 = arith.constant 0 : i32
    %c0_i32_1 = arith.constant 0 : i32
    return %c0_i32, %c0_i32_0 : i32, i32
  }
  func.func @transform_9(%arg0: i32) -> (i32, i32) {
    %c0_i32 = arith.constant 0 : i32
    %c0_i32_0 = arith.constant 0 : i32
    %c0_i32_1 = arith.constant 0 : i32
    return %c0_i32, %c0_i32_0 : i32, i32
  }
  func.func @transform_10(%arg0: i32) -> (i32, i32, i32) {
    %c0_i32 = arith.constant 0 : i32
    %c0_i32_0 = arith.constant 0 : i32
    %c0_i32_1 = arith.constant 0 : i32
    return %arg0, %c0_i32, %c0_i32_0 : i32, i32, i32
  }
}

</mosaic_0001>

<bundles_post_ra>
// kernel: tpu_custom_call.1
= control target key start
LH: loop header
LB: loop body
LE: loop exit
PB: predicated region body
PF: predicated region fallthrough
CT: control target
= control target key end

     0   :  { %15 = vsyncpa [#allocation3], 0  ;;  %s2077_s0 = inlined_call_operand.vmem [shape: bf16[2,192,64], index: 0, kind: input, shape index: {}]   ;;  %s2078_s1 = inlined_call_operand.vmem [shape: bf16[64,256], index: 1, kind: input, shape index: {}]   ;;  %s2079_s2 = inlined_call_operand.vmem [shape: bf16[2,4,4], index: 2, kind: input, shape index: {}]   ;;  %s2080_s3 = inlined_call_operand.vmem [shape: bf16[2,2,4,4], index: 3, kind: input, shape index: {}]   ;;  %s2081_s4 = inlined_call_operand.vmem [shape: bf16[4,64], index: 4, kind: input, shape index: {}]   ;;  %s2082_s5 = inlined_call_operand.vmem [shape: bf16[2,8,8], index: 5, kind: input, shape index: {}]   ;;  %s2083_s6 = inlined_call_operand.vmem [shape: bf16[2,2,8,8], index: 6, kind: input, shape index: {}]   ;;  %s2084_s7 = inlined_call_operand.vmem [shape: bf16[8,64], index: 7, kind: input, shape index: {}]   ;;  %s2085_s8 = inlined_call_operand.vmem [shape: bf16[8,4], index: 8, kind: input, shape index: {}]   ;;  %s2086_s9 = inlined_call_operand.vmem [shape: bf16[4,8], index: 9, kind: input, shape index: {}]   ;;  %s2087_s10 = inlined_call_operand.hbm [shape: f32[2,2,4], index: 10, kind: output, shape index: {}]  }
   0x1   :  { %17 = vsyncpa [#allocation3 + $0x1], 0  ;;  %s1754_s13 = smov 0   ;;  %s1756_s14 = smov 0  }
   0x2   :  { %s1758_s15 = smov 0   ;;  %s1760_s16 = smov 0  }
   0x3 LB: > { %s1775_s17 = sadd.s32 4294967295, %s1693_s16   ;;  %s1370_s18 = sadd.s32 4294967294, %s1693_s16   ;;  %s1693_s16 = sphi %s1760_s16, %s2093_s16   ;;  %s1689_s15 = sphi %s1758_s15, %s2092_s15   ;;  %s1685_s14 = sphi %s1756_s14, %s2091_s14   ;;  %s1681_s13 = sphi %s1754_s13, %s2090_s13  }
   0x4   : > { %s1779_s19 = sadd.s32 1, %s1693_s16   ;;  %s265_s20 = sadd.s32 1, %s1689_s15 }
   0x5   : > { %s262_s21 = ssub.s32 %s1693_s16, %s1779_s19  ;;  %p275_p0 = scmp.ne.s32.totalorder %s1689_s15, %s1685_s14 }
   0x6   : > { %p263_p1 = scmp.eq.s32.totalorder %s262_s21, 0  ;;  %p276_p2 = scmp.eq.s32.totalorder %s1775_s17, 1 }
   0x7   : > { %p281_p3 = scmp.ne.s32.totalorder %s1685_s14, %s1681_s13  ;;  %p282_p4 = scmp.eq.s32.totalorder %s1370_s18, 1 }
   0x8   : > { %s1790_s22 = scalar_select %p263_p1, %s1689_s15, %s265_s20  }
   0x9   : > { %p1792_p5 = por %p276_p2, %p275_p0  ;;  %p1796_p6 = por %p282_p4, %p281_p3 }
   0xa   : > { %p1373_p7 = scmp.ge.s32.totalorder %s1693_s16, 1  ;;  %p353_p8 = scmp.lt.s32.totalorder %s1693_s16, 3 }
   0xc   : > { %p354_p9 = pnand %p1373_p7, %p353_p8 }
   0xd   : > { %v1595_v0 = vld [vmem:[%s2078_s1 + $0x4] ss:$8 sps:$4 sm:$0xff] (!%p354_p9)   ;;  %p409_p10 = scmp.lt.s32.totalorder (!%p354_p9), %s1775_s17, 1  ;;  %v1597_v1 = vld [vmem:[%s2078_s1] ss:$8 sps:$4 sm:$0xff] (!%p354_p9)   ;;  %v1695_v2 = vmov (!%p354_p9), 0  }
   0xe   : > { %357 = sbr.rel (%p354_p9) target bundleno = 1192 (0x4a8), region = 60  ;;  %634 = vmatprep.mubr.bf16.mxu0 (!%p354_p9), %v1695_v2  ;;  %602 = vmatprep.subr.bf16.mxu0 (!%p354_p9), %v1595_v0  ;;  %v1598_v3 = vld [vmem:[%s2078_s1 + $0x14] ss:$8 sps:$4 sm:$0xff] (!%p354_p9)   ;;  %v1600_v4 = vld [vmem:[%s2078_s1 + $0x10] ss:$8 sps:$4 sm:$0xff] (!%p354_p9)   ;;  %vm565_vm0 = vcmask (!%p354_p9), 523264  }
   0xf   : > { %603 = vmatpush1.bf16.msra.mxu0 (!%p354_p9), %v1597_v1  ;;  %v1601_v5 = vld [vmem:[%s2078_s1 + $0x24] ss:$8 sps:$4 sm:$0xff] (!%p354_p9)   ;;  %v1603_v6 = vld [vmem:[%s2078_s1 + $0x20] ss:$8 sps:$4 sm:$0xff] (!%p354_p9)   ;;  %v1604_v7 = vld [vmem:[%s2078_s1 + $0x34] ss:$8 sps:$4 sm:$0xff] (!%p354_p9)  }
  0x10   : > { %604 = vmatprep.subr.bf16.mxu0 (!%p354_p9), %v1598_v3  ;;  %v1606_v8 = vld [vmem:[%s2078_s1 + $0x30] ss:$8 sps:$4 sm:$0xff] (!%p354_p9)   ;;  %v1696_v21 = vmov (!%p354_p9), 0.0   ;;  %vm1697_vm1 = vmmov (!%p354_p9), 0   ;;  %v1896_v46 = vld [vmem:[%s2081_s4] sm:$0x3] (!%p354_p9) }
  0x11   : > { %1468 = vmatprep.subr.bf16.mxu1 (!%p354_p9), %v1696_v21  ;;  %1476 = vmatprep.mubr.msk.bf16.mxu1 (!%p354_p9), %vm1697_vm1, %v1696_v21  ;;  %vm937_vm3 = vcmask (!%p354_p9), 27648   ;;  %vm1110_vm4 = vcmask (!%p354_p9), 1041408   ;;  %vm1106_vm9 = vcmask (!%p354_p9), 31744   ;;  %vm1221_vm13 = vcmask (!%p354_p9), 64512   ;;  %s1698_s27 = smov (!%p354_p9), [#allocation2]  }
  0x12   : > { %vm948_vm15 = vcmask (!%p354_p9), 7168  }
  0x13   : > { %605 = vmatpush1.bf16.msra.mxu0 (!%p354_p9), %v1600_v4 }
  0x14   : > { %606 = vmatprep.subr.bf16.mxu0 (!%p354_p9), %v1601_v5 }
  0x15   : > { %s1813_s11 = scalar_select %p409_p10, %s1775_s17, 1 }
  0x17   : > { %s1552_s25 = smul.u32 96, %s1813_s11  ;;  %607 = vmatpush1.bf16.msra.mxu0 %v1603_v6  ;;  %s1376_s29 = sshll.u32 %s1813_s11, 1 }
  0x18   : > { %608 = vmatprep.subr.bf16.mxu0 %v1604_v7  ;;  %s417_s18 = scalar_lea.vmem %s2079_s2, %s1376_s29  ;;  %s1429_s12 = sshll.u32 %s1813_s11, 3 }
  0x19   : > { %s1825_s28 = scalar_lea.vmem %s2077_s0, %s1552_s25  ;;  %s1428_s25 = sshll.u32 %s1813_s11, 2 }
  0x1a   : > { %v1607_v9 = vld [vmem:[%s1825_s28] sm:$0xff]   ;;  %v1608_v10 = vld [vmem:[%s1825_s28 + $0x8] sm:$0xff]   ;;  %v1609_v11 = vld [vmem:[%s1825_s28 + $0x10] sm:$0xff]   ;;  %s431_s21 = scalar_lea.vmem %s2083_s6, %s1429_s12  ;;  %s406_s11 = sand.u32 1, %s1685_s14  }
  0x1b   : > { %609 = vmatpush1.bf16.msra.mxu0 %v1606_v8  ;;  %v1610_v12 = vld [vmem:[%s1825_s28 + $0x18] sm:$0xff]   ;;  %v1611_v13 = vld [vmem:[%s1825_s28 + $0x20] sm:$0xff]   ;;  %v1612_v14 = vld [vmem:[%s1825_s28 + $0x28] sm:$0xff]   ;;  %s1425_s29 = sshll.u32 %s1775_s17, 5  ;;  %s1250_s17 = scalar_lea.sflag [#allocation3], %s406_s11 }
  0x1c   : > { %v1613_v15 = vld [vmem:[%s1825_s28 + $0x30] sm:$0xff]   ;;  %v1614_v16 = vld [vmem:[%s1825_s28 + $0x38] sm:$0xff]   ;;  %v1615_v17 = vld [vmem:[%s1825_s28 + $0x40] sm:$0xff]   ;;  %1546 = vmatprep.subr.bf16.mxu0 %v1696_v21 }
  0x1d   : > { %v1616_v18 = vld [vmem:[%s1825_s28 + $0x48] sm:$0xff]   ;;  %v1617_v19 = vld [vmem:[%s1825_s28 + $0x50] sm:$0xff]   ;;  %v1618_v20 = vld [vmem:[%s1825_s28 + $0x58] sm:$0xff]   ;;  %s422_s28 = scalar_lea.vmem %s2080_s3, %s1428_s25 }
  0x1e   : > { %1402 = vmatmul.mubr.msk.bf16.vlgmr.msra.gmra.mrb[0].mxu0 %vm565_vm0, %v1607_v9 }
  0x1f   : > { %644 = vmatprep.mubr.bf16.mxu0 %v1695_v2 }
  0x26   : > { %1403 = vmatmul.mubr.msk.bf16.gmra.mrb[4].mxu0 %vm565_vm0, %v1608_v10 }
  0x27   : > { %654 = vmatprep.mubr.bf16.mxu0 %v1695_v2 }
  0x2e   : > { %1404 = vmatmul.mubr.msk.bf16.gmra.mrb[8].mxu0 %vm565_vm0, %v1609_v11 }
  0x2f   : > { %664 = vmatprep.mubr.bf16.mxu0 %v1695_v2 }
  0x36   : > { %1405 = vmatmul.mubr.msk.bf16.gmra.mrb[12].mxu0 %vm565_vm0, %v1610_v12 }
  0x37   : > { %674 = vmatprep.mubr.bf16.mxu0 %v1695_v2 }
  0x3e   : > { %1406 = vmatmul.mubr.msk.bf16.gmra.mrb[16].mxu0 %vm565_vm0, %v1611_v13 }
  0x3f   : > { %684 = vmatprep.mubr.bf16.mxu0 %v1695_v2 }
  0x46   : > { %1407 = vmatmul.mubr.msk.bf16.gmra.mrb[20].mxu0 %vm565_vm0, %v1612_v14 }
  0x47   : > { %694 = vmatprep.mubr.bf16.mxu0 %v1695_v2 }
  0x4e   : > { %1408 = vmatmul.mubr.msk.bf16.gmra.mrb[24].mxu0 %vm565_vm0, %v1613_v15 }
  0x4f   : > { %704 = vmatprep.mubr.bf16.mxu0 %v1695_v2 }
  0x56   : > { %1409 = vmatmul.mubr.msk.bf16.gmra.mrb[28].mxu0 %vm565_vm0, %v1614_v16 }
  0x57   : > { %714 = vmatprep.mubr.bf16.mxu0 %v1695_v2 }
  0x5e   : > { %1410 = vmatmul.mubr.msk.bf16.gmra.mrb[32].mxu0 %vm565_vm0, %v1615_v17 }
  0x5f   : > { %724 = vmatprep.mubr.bf16.mxu0 %v1695_v2 }
  0x66   : > { %1411 = vmatmul.mubr.msk.bf16.gmra.mrb[36].mxu0 %vm565_vm0, %v1616_v18 }
  0x67   : > { %734 = vmatprep.mubr.bf16.mxu0 %v1695_v2 }
  0x6e   : > { %1412 = vmatmul.mubr.msk.bf16.gmra.mrb[40].mxu0 %vm565_vm0, %v1617_v19 }
  0x6f   : > { %744 = vmatprep.mubr.bf16.mxu0 %v1695_v2 }
  0x76   : > { %1413 = vmatmul.mubr.msk.bf16.gmra.mrb[44].mxu0 %vm565_vm0, %v1618_v20 }
  0x77   : > { %1548 = vmatprep.mubr.msk.bf16.mxu0 %vm1697_vm1, %v1696_v21 }
  0xf1   : > { %v636_v22 = vpop.f32.mrb[0].mxu0 }
  0xf2   : > { %v1866_v23 = vpop.f32.mrb[1].mxu0 }
  0xf3   : > { %v640_v24 = vpop.f32.mrb[2].mxu0 }
  0xf4   : > { %v755_v25 = vpack.c.bf16 %v640_v24, %v636_v22  ;;  %v1868_v26 = vpop.f32.mrb[3].mxu0 }
  0xf5   : > { %v756_v27 = vpack.c.bf16 %v1868_v26, %v1866_v23  ;;  %v962_v23 = vld [vmem:[%s2084_s7] sm:$0xf] }
  0xf6   : > { %1469 = vmatpush3.bf16.msra.mxu1 %v755_v25  ;;  %v919_v26 = vld [vmem:[%s417_s18] sm:$0x3] }
  0xf7   : > { %1470 = vmatprep.subr.bf16.mxu1 %v1696_v21 }
  0xf9   : > { %v646_v28 = vpop.f32.mrb[4].mxu0 }
  0xfa   : > { %v1873_v29 = vpop.f32.mrb[5].mxu0 }
  0xfb   : > { %v650_v30 = vpop.f32.mrb[6].mxu0 }
  0xfc   : > { %v757_v31 = vpack.c.bf16 %v650_v30, %v646_v28  ;;  %v1875_v32 = vpop.f32.mrb[7].mxu0 }
  0xfd   : > { %v758_v33 = vpack.c.bf16 %v1875_v32, %v1873_v29 }
  0xfe   : > { %1471 = vmatpush3.bf16.msra.mxu1 %v757_v31 }
  0xff   : > { %1472 = vmatprep.subr.bf16.mxu1 %v1696_v21 }
 0x101   : > { %v656_v34 = vpop.f32.mrb[8].mxu0 }
 0x102   : > { %v1880_v35 = vpop.f32.mrb[9].mxu0 }
 0x103   : > { %v660_v36 = vpop.f32.mrb[10].mxu0 }
 0x104   : > { %v759_v37 = vpack.c.bf16 %v660_v36, %v656_v34  ;;  %v1882_v38 = vpop.f32.mrb[11].mxu0 }
 0x105   : > { %v760_v39 = vpack.c.bf16 %v1882_v38, %v1880_v35 }
 0x106   : > { %1473 = vmatpush3.bf16.msra.mxu1 %v759_v37 }
 0x107   : > { %1474 = vmatprep.subr.bf16.mxu1 %v1696_v21 }
 0x109   : > { %v666_v40 = vpop.f32.mrb[12].mxu0 }
 0x10a   : > { %v1887_v41 = vpop.f32.mrb[13].mxu0 }
 0x10b   : > { %v670_v42 = vpop.f32.mrb[14].mxu0 }
 0x10c   : > { %v761_v43 = vpack.c.bf16 %v670_v42, %v666_v40  ;;  %v1889_v44 = vpop.f32.mrb[15].mxu0 }
 0x10d   : > { %v762_v45 = vpack.c.bf16 %v1889_v44, %v1887_v41 }
 0x10e   : > { %1475 = vmatpush3.bf16.msra.mxu1 %v761_v43 }
 0x10f   : > { %1480 = vmatprep.subr.bf16.mxu1 %v1696_v21 }
 0x111   : > { %v676_v47 = vpop.f32.mrb[16].mxu0  ;;  %1477 = vmatmul.mubr.msk.bf16.vlgmr.msra.gmra.mrb[0].mxu1 %vm565_vm0, %v1896_v46 }
 0x112   : > { %v1901_v48 = vpop.f32.mrb[17].mxu0  ;;  %1488 = vmatprep.mubr.msk.bf16.mxu1 %vm1697_vm1, %v1696_v21 }
 0x113   : > { %v680_v49 = vpop.f32.mrb[18].mxu0 }
 0x114   : > { %v763_v50 = vpack.c.bf16 %v680_v49, %v676_v47  ;;  %v1905_v51 = vpop.f32.mrb[19].mxu0 }
 0x115   : > { %v764_v52 = vpack.c.bf16 %v1905_v51, %v1901_v48 }
 0x116   : > { %1481 = vmatpush3.bf16.msra.mxu1 %v763_v50 }
 0x117   : > { %1482 = vmatprep.subr.bf16.mxu1 %v1696_v21 }
 0x119   : > { %v686_v53 = vpop.f32.mrb[20].mxu0 }
 0x11a   : > { %v1910_v54 = vpop.f32.mrb[21].mxu0 }
 0x11b   : > { %v690_v55 = vpop.f32.mrb[22].mxu0 }
 0x11c   : > { %v765_v56 = vpack.c.bf16 %v690_v55, %v686_v53  ;;  %v1912_v57 = vpop.f32.mrb[23].mxu0 }
 0x11d   : > { %v766_v58 = vpack.c.bf16 %v1912_v57, %v1910_v54 }
 0x11e   : > { %1483 = vmatpush3.bf16.msra.mxu1 %v765_v56 }
 0x11f   : > { %1484 = vmatprep.subr.bf16.mxu1 %v1696_v21 }
 0x121   : > { %v696_v59 = vpop.f32.mrb[24].mxu0 }
 0x122   : > { %v1917_v60 = vpop.f32.mrb[25].mxu0 }
 0x123   : > { %v700_v61 = vpop.f32.mrb[26].mxu0 }
 0x124   : > { %v767_v62 = vpack.c.bf16 %v700_v61, %v696_v59  ;;  %v1919_v63 = vpop.f32.mrb[27].mxu0  ;;  %v904_v59 = vld [vmem:[%s422_s28 + $0x2] sm:$0x3] }
 0x125   : > { %v768_v0 = vpack.c.bf16 %v1919_v63, %v1917_v60  ;;  %v906_v61 = vunpack.c.l.bf16 %v904_v59 }
 0x126   : > { %1485 = vmatpush3.bf16.msra.mxu1 %v767_v62 }
 0x127   : > { %1486 = vmatprep.subr.bf16.mxu1 %v1696_v21 }
 0x129   : > { %v706_v1 = vpop.f32.mrb[28].mxu0 }
 0x12a   : > { %v708_v2 = vpop.f32.mrb[29].mxu0 }
 0x12b   : > { %v710_v3 = vpop.f32.mrb[30].mxu0 }
 0x12c   : > { %v769_v4 = vpack.c.bf16 %v710_v3, %v706_v1  ;;  %v712_v5 = vpop.f32.mrb[31].mxu0 }
 0x12d   : > { %v770_v6 = vpack.c.bf16 %v712_v5, %v708_v2 }
 0x12e   : > { %1487 = vmatpush3.bf16.msra.mxu1 %v769_v4 }
 0x12f   : > { %1492 = vmatprep.subr.bf16.mxu1 %v1696_v21 }
 0x131   : > { %v716_v7 = vpop.f32.mrb[32].mxu0  ;;  %1489 = vmatmul.mubr.msk.bf16.vlgmr.msra.gmra.mrb[4].mxu1 %vm565_vm0, %v1896_v46 }
 0x132   : > { %v718_v8 = vpop.f32.mrb[33].mxu0  ;;  %1500 = vmatprep.mubr.msk.bf16.mxu1 %vm1697_vm1, %v1696_v21 }
 0x133   : > { %v720_v9 = vpop.f32.mrb[34].mxu0 }
 0x134   : > { %v771_v10 = vpack.c.bf16 %v720_v9, %v716_v7  ;;  %v722_v11 = vpop.f32.mrb[35].mxu0 }
 0x135   : > { %v772_v12 = vpack.c.bf16 %v722_v11, %v718_v8 }
 0x136   : > { %1493 = vmatpush3.bf16.msra.mxu1 %v771_v10 }
 0x137   : > { %1494 = vmatprep.subr.bf16.mxu1 %v1696_v21 }
 0x139   : > { %v726_v13 = vpop.f32.mrb[36].mxu0 }
 0x13a   : > { %v728_v14 = vpop.f32.mrb[37].mxu0 }
 0x13b   : > { %v730_v15 = vpop.f32.mrb[38].mxu0 }
 0x13c   : > { %v773_v16 = vpack.c.bf16 %v730_v15, %v726_v13  ;;  %v732_v17 = vpop.f32.mrb[39].mxu0 }
 0x13d   : > { %v774_v18 = vpack.c.bf16 %v732_v17, %v728_v14 }
 0x13e   : > { %1495 = vmatpush3.bf16.msra.mxu1 %v773_v16 }
 0x13f   : > { %1496 = vmatprep.subr.bf16.mxu1 %v1696_v21 }
 0x141   : > { %v736_v19 = vpop.f32.mrb[40].mxu0 }
 0x142   : > { %v738_v20 = vpop.f32.mrb[41].mxu0 }
 0x143   : > { %v740_v22 = vpop.f32.mrb[42].mxu0 }
 0x144   : > { %v775_v24 = vpack.c.bf16 %v740_v22, %v736_v19  ;;  %v742_v25 = vpop.f32.mrb[43].mxu0  ;;  %v1105_v22 = vld [vmem:[%s2085_s8] sm:$0xf] }
 0x145   : > { %v776_v28 = vpack.c.bf16 %v742_v25, %v738_v20 }
 0x146   : > { %1497 = vmatpush3.bf16.msra.mxu1 %v775_v24 }
 0x147   : > { %1498 = vmatprep.subr.bf16.mxu1 %v1696_v21 }
 0x149   : > { %v746_v30 = vpop.f32.mrb[44].mxu0 }
 0x14a   : > { %v748_v31 = vpop.f32.mrb[45].mxu0 }
 0x14b   : > { %v750_v34 = vpop.f32.mrb[46].mxu0 }
 0x14c   : > { %v777_v36 = vpack.c.bf16 %v750_v34, %v746_v30  ;;  %v752_v37 = vpop.f32.mrb[47].mxu0 }
 0x14d   : > { %v778_v40 = vpack.c.bf16 %v752_v37, %v748_v31  ;;  %v1431_v31 = vld [vmem:[%s431_s21] sm:$0xff]   ;;  %s2035_s21 = scalar_lea.hbm %s2087_s10, %s1425_s29 }
 0x14e   : > { %1499 = vmatpush3.bf16.msra.mxu1 %v777_v36  ;;  %v1432_v34 = vunpack.c.l.bf16 %v1431_v31  ;;  %v1433_v37 = vunpack.c.h.bf16 %v1431_v31 }
 0x14f   : > { %1504 = vmatprep.subr.bf16.mxu1 %v1696_v21 }
 0x151   : > { %1501 = vmatmul.mubr.msk.bf16.vlgmr.msra.gmra.mrb[8].mxu1 %vm565_vm0, %v1896_v46 }
 0x152   : > { %1505 = vmatpush3.bf16.msra.mxu1 %v756_v27  ;;  %1512 = vmatprep.mubr.msk.bf16.mxu1 %vm1697_vm1, %v1696_v21  ;;  %v920_v27 = vunpack.c.l.bf16 %v919_v26 }
 0x153   : > { %1506 = vmatprep.subr.bf16.mxu1 %v1696_v21 }
 0x154   : > { %v921_v29 = vand.u32 2147483647, %v920_v27  ;;  %v930_v42 = vmax.f32 %v920_v27, 0.0 }
 0x156   : > { %1507 = vmatpush3.bf16.msra.mxu1 %v758_v33  ;;  %v922_v32 = vsub.f32 0.0, %v921_v29 }
 0x157   : > { %1508 = vmatprep.subr.bf16.mxu1 %v1696_v21 }
 0x158   : > { %v923_v33 = vmul.f32 1.442695, %v922_v32 }
 0x15a   : > { %1509 = vmatpush3.bf16.msra.mxu1 %v760_v39  ;;  %1619 = vpow2.f32 %v923_v33 }
 0x15b   : > { %1510 = vmatprep.subr.bf16.mxu1 %v1696_v21 }
 0x15e   : > { %1511 = vmatpush3.bf16.msra.mxu1 %v762_v45 }
 0x15f   : > { %1516 = vmatprep.subr.bf16.mxu1 %v1696_v21 }
 0x161   : > { %1513 = vmatmul.mubr.msk.bf16.vlgmr.msra.gmra.mrb[12].mxu1 %vm565_vm0, %v962_v23 }
 0x162   : > { %1517 = vmatpush3.bf16.msra.mxu1 %v764_v52  ;;  %1524 = vmatprep.mubr.msk.bf16.mxu1 %vm1697_vm1, %v1696_v21  ;;  %v1155_v52 = vld [vmem:[%s2086_s9] sm:$0x3] }
 0x163   : > { %1518 = vmatprep.subr.bf16.mxu1 %v1696_v21  ;;  %v1160_v53 = vsel %vm1110_vm4, %v1155_v52, 0 }
 0x164   : > { %v1620_v35 = vpop.eup %1619  ;;  %1547 = vmatpush3.bf16.msra.mxu0 %v1160_v53 }
 0x165   : > { %v926_v38 = vadd.f32 1.0, %v1620_v35  ;;  %vm925_vm2 = vcmp.gt.f32.partialorder %v1620_v35, 1e-05 }
 0x166   : > { %1519 = vmatpush3.bf16.msra.mxu1 %v766_v58  ;;  %v903_v58 = vld [vmem:[%s422_s28] sm:$0x3]  ;;  %s426_s28 = scalar_lea.vmem %s2082_s5, %s1428_s25  ;;  %s1374_s25 = sshll.u32 %s406_s11, 1 }
 0x167   : > { %1520 = vmatprep.subr.bf16.mxu1 %v1696_v21  ;;  %1621 = vlog2.f32 %v926_v38  ;;  %v905_v60 = vunpack.c.l.bf16 %v903_v58  ;;  %s408_s30 = scalar_lea.vmem [#allocation2], %s1374_s25 }
 0x168   : > { %s1263_s12 = sshll.u32 %s408_s30, 4  ;;  %s2037_s12 = int_to_ptr.vmem [resolvable:$true] %s1263_s12 }
 0x169   : > { %s1631_s26 = scalar_lea.vmem %s2037_s12, 32 }
 0x16a   : > { %1521 = vmatpush3.bf16.msra.mxu1 %v768_v0  ;;  %p1632_p11 = scmp.ne.s32.totalorder %s2037_s12, %s1631_s26 }
 0x16b   : > { %1522 = vmatprep.subr.bf16.mxu1 %v1696_v21 }
 0x16c   : > { %p1633_p12 = pnand %p1632_p11, %p1792_p5 }
 0x16e   : > { %1523 = vmatpush3.bf16.msra.mxu1 %v770_v6  ;;  %p1634_p13 = pneg %p1633_p12 }
 0x16f   : > { %1528 = vmatprep.subr.bf16.mxu1 %v1696_v21 }
 0x171   : > { %1525 = vmatmul.mubr.msk.bf16.vlgmr.msra.gmra.mrb[16].mxu1 %vm565_vm0, %v962_v23  ;;  %v1622_v39 = vpop.eup %1621 }
 0x172   : > { %1529 = vmatpush3.bf16.msra.mxu1 %v772_v12  ;;  %1536 = vmatprep.mubr.msk.bf16.mxu1 %vm1697_vm1, %v1696_v21  ;;  %v928_v41 = vmul.f32 0.6931472, %v1622_v39 }
 0x173   : > { %1530 = vmatprep.subr.bf16.mxu1 %v1696_v21 }
 0x174   : > { %v929_v47 = vsel %vm925_vm2, %v928_v41, %v1620_v35  ;;  %vm952_vm2 = vcmask 19456  }
 0x176   : > { %1531 = vmatpush3.bf16.msra.mxu1 %v774_v18 }
 0x177   : > { %1532 = vmatprep.subr.bf16.mxu1 %v1696_v21 }
 0x17a   : > { %1533 = vmatpush3.bf16.msra.mxu1 %v776_v28 }
 0x17b   : > { %1534 = vmatprep.subr.bf16.mxu1 %v1696_v21 }
 0x17e   : > { %1535 = vmatpush3.bf16.msra.mxu1 %v778_v40 }
 0x17f   : > { %1540 = vmatprep.subr.bf16.mxu1 %v1696_v21 }
 0x181   : > { %1537 = vmatmul.mubr.msk.bf16.vlgmr.msra.gmra.mrb[20].mxu1 %vm565_vm0, %v962_v23  ;;  %vm950_vm0 = vcmask 15360  }
 0x182   : > { %1542 = vmatprep.mubr.msk.bf16.mxu1 %vm1697_vm1, %v1696_v21  ;;  %vm960_vm1 = vcmask 23552  }
 0x1e4   : > { %v817_v43 = vpop.f32.mrb[0].mxu1 }
 0x1e5   : > { %v931_v44 = vmul.f32 %v920_v27, %v817_v43  ;;  %v1478_v45 = vpop.f32.mrb[1].mxu1  ;;  %vm934_vm5 = vcmp.gt.f32.partialorder %v817_v43, 0.0 }
 0x1e6   : > { %v820_v46 = vpop.f32.mrb[2].mxu1  ;;  %v1997_v16 = vsel %vm934_vm5, 1.0, %v1696_v21 }
 0x1e7   : > { %v1479_v48 = vpop.f32.mrb[3].mxu1  ;;  %v932_v49 = vsub.f32 %v930_v42, %v931_v44  ;;  %v1203_v44 = vld [vmem:[%s426_s28] sm:$0xf]  ;;  %s1635_s28 = sshll.u32 %s1698_s27, 4  ;;  %s1636_s28 = int_to_ptr.vmem [resolvable:$false] %s1635_s28 }
 0x1e8   : > { %v1204_v45 = vunpack.c.l.bf16 %v1203_v44  ;;  %s1637_s25 = scalar_lea.vmem %s1636_s28, 64  ;;  %p1638_p0 = scmp.lt.s32.totalorder %s2037_s12, %s1636_s28 }
 0x1e9   : > { %v933_v50 = vadd.f32 %v932_v49, %v929_v47  ;;  %p1639_p1 = scmp.lt.s32.totalorder %s1637_s25, %s1631_s26 }
 0x1ea   : > { %v1205_v46 = vand.u32 2147483647, %v1204_v45 }
 0x1eb   : > { %v938_v51 = vsel %vm937_vm3, %v933_v50, 0.0  ;;  %p1640_p2 = por %p1639_p1, %p1638_p0 }
 0x1ec   : > { %939 = vadd.xlane.f32.xlu1 %v938_v51  ;;  %v1206_v47 = vsub.f32 0.0, %v1205_v46 }
 0x1ed   : > { %p1641_p3 = pnand %p1640_p2, %p1634_p13 }
 0x1ee   : > { %v1207_v48 = vmul.f32 1.442695, %v1206_v47 }
 0x204   : > { %v857_v54 = vpop.f32.mrb[4].mxu1 }
 0x205   : > { %v1490_v55 = vpop.f32.mrb[5].mxu1  ;;  %v907_v62 = vsub.f32 %v905_v60, %v857_v54  ;;  %v1214_v60 = vmax.f32 %v1204_v45, 0.0 }
 0x206   : > { %v860_v56 = vpop.f32.mrb[6].mxu1 }
 0x207   : > { %v1491_v57 = vpop.f32.mrb[7].mxu1  ;;  %v909_v3 = vmul.f32 %v907_v62, %v907_v62 }
 0x224   : > { %v897_v63 = vpop.f32.mrb[8].mxu1 }
 0x225   : > { %v908_v0 = vsub.f32 %v906_v61, %v897_v63  ;;  %v1502_v1 = vpop.f32.mrb[9].mxu1 }
 0x226   : > { %v900_v2 = vpop.f32.mrb[10].mxu1 }
 0x227   : > { %v910_v4 = vmul.f32 %v908_v0, %v908_v0  ;;  %v1503_v5 = vpop.f32.mrb[11].mxu1 }
 0x229   : > { %v911_v6 = vadd.f32 %v910_v4, %v909_v3 }
 0x22b   : > { %1623 = vrsqrt.f32 %v911_v6  ;;  %vm914_vm6 = vcmp.eq.f32.partialorder %v911_v6, inf  ;;  %v917_v12 = vand.u32 2147483648, %v911_v6  ;;  %vm916_vm7 = vcmp.eq.f32.partialorder %v911_v6, 0.0 }
 0x22c   : > { %1625 = vpow2.f32 %v1207_v48 }
 0x234   : > { %v1994_v7 = vpop.f32.mrb[12].mxu1 }
 0x235   : > { %v1624_v8 = vpop.eup %1623  ;;  %v1514_v9 = vpop.f32.mrb[13].mxu1 }
 0x236   : > { %v913_v10 = vmul.f32 %v1624_v8, %v911_v6  ;;  %v1003_v11 = vpop.f32.mrb[14].mxu1  ;;  %v1626_v49 = vpop.eup %1625  ;;  %v945_v8 = vsel %vm937_vm3, %v1997_v16, 0.0 }
 0x237   : > { %v1515_v13 = vpop.f32.mrb[15].mxu1  ;;  %v1210_v50 = vadd.f32 1.0, %v1626_v49  ;;  %vm1209_vm12 = vcmp.gt.f32.partialorder %v1626_v49, 1e-05 }
 0x238   : > { %v915_v14 = vsel %vm914_vm6, %v911_v6, %v913_v10 }
 0x239   : > { %v918_v15 = vsel %vm916_vm7, %v917_v12, %v915_v14 }
 0x23a   : > { %vm1102_vm8 = vcmp.lt.f32.partialorder %v918_v15, 0.125  ;;  %v2000_v17 = vmul.f32 %v1997_v16, %v918_v15 }
 0x23b   : > { %v1103_v18 = vsel %vm1102_vm8, 1.0, %v1696_v21 }
 0x23c   : > { %v1104_v19 = vpack.c.bf16 %v1103_v18, %v1103_v18 }
 0x23e   : > { %v1112_v20 = vsel %vm1110_vm4, %v1104_v19, 0  ;;  %vm1247_vm4 = vcmask 25600  }
 0x23f   : > { %1541 = vmatpush3.bf16.msra.mxu1 %v1112_v20 }
 0x242   : > { %1543 = vmatmul.mubr.msk.bf16.vlgmr.msra.gmra.mrb[24].mxu1 %vm1106_vm9, %v1105_v22 }
 0x244   : > { %v1040_v24 = vpop.f32.mrb[16].mxu1 }
 0x245   : > { %v1526_v25 = vpop.f32.mrb[17].mxu1  ;;  %v1090_v36 = vsub.f32 %v1432_v34, %v1040_v24 }
 0x246   : > { %v1043_v28 = vpop.f32.mrb[18].mxu1 }
 0x247   : > { %v1527_v30 = vpop.f32.mrb[19].mxu1  ;;  %v1092_v23 = vmul.f32 %v1090_v36, %v1090_v36 }
 0x254   : > { %v1080_v40 = vpop.f32.mrb[20].mxu1 }
 0x255   : > { %v1091_v26 = vsub.f32 %v1433_v37, %v1080_v40  ;;  %v1538_v27 = vpop.f32.mrb[21].mxu1 }
 0x256   : > { %v1083_v29 = vpop.f32.mrb[22].mxu1 }
 0x257   : > { %v1093_v32 = vmul.f32 %v1091_v26, %v1091_v26  ;;  %v1539_v33 = vpop.f32.mrb[23].mxu1 }
 0x259   : > { %v1094_v35 = vadd.f32 %v1093_v32, %v1092_v23 }
 0x25b   : > { %1627 = vrsqrt.f32 %v1094_v35  ;;  %vm1097_vm10 = vcmp.eq.f32.partialorder %v1094_v35, inf  ;;  %v1100_v56 = vand.u32 2147483648, %v1094_v35  ;;  %vm1099_vm11 = vcmp.eq.f32.partialorder %v1094_v35, 0.0 }
 0x25c   : > { %1629 = vlog2.f32 %v1210_v50 }
 0x265   : > { %v1628_v51 = vpop.eup %1627 }
 0x266   : > { %v1096_v52 = vmul.f32 %v1628_v51, %v1094_v35  ;;  %v1630_v53 = vpop.eup %1629 }
 0x267   : > { %v1212_v57 = vmul.f32 0.6931472, %v1630_v53 }
 0x268   : > { %v1098_v55 = vsel %vm1097_vm10, %v1094_v35, %v1096_v52 }
 0x269   : > { %v1101_v1 = vsel %vm1099_vm11, %v1100_v56, %v1098_v55  ;;  %v1213_v2 = vsel %vm1209_vm12, %v1212_v57, %v1626_v49 }
 0x279   : > { %v940_v10 = vpop.xlane.xlu1 %939 }
 0x315   : > { %v1148_v38 = vpop.f32.mrb[24].mxu1 }
 0x316   : > { %v1154_v39 = vpack.c.bf16 %v1148_v38, %v1148_v38  ;;  %v1544_v41 = vpop.f32.mrb[25].mxu1 }
 0x317   : > { %v1151_v42 = vpop.f32.mrb[26].mxu1 }
 0x318   : > { %1549 = vmatmul.mubr.msk.bf16.vlgmr.msra.gmra.mrb[48].mxu0 %vm1106_vm9, %v1154_v39  ;;  %v1545_v43 = vpop.f32.mrb[27].mxu1 }
 0x3eb   : > { %v1196_v54 = vpop.f32.mrb[48].mxu0 }
 0x3ec   : > { %v1202_v58 = vmul.f32 %v1196_v54, %v1994_v7  ;;  %v1550_v59 = vpop.f32.mrb[49].mxu0 }
 0x3ed   : > { %v1199_v61 = vpop.f32.mrb[50].mxu0 }
 0x3ee   : > { %v1215_v62 = vmul.f32 %v1204_v45, %v1202_v58  ;;  %v1551_v63 = vpop.f32.mrb[51].mxu0  ;;  %vm1218_vm14 = vcmp.gt.f32.partialorder %v1202_v58, 0.0 }
 0x3ef   : > { %v1423_v0 = vsel %vm1218_vm14, 1.0, %v1696_v21  ;;  %v942_v21 = vsel %vm937_vm3, %v2000_v17, 0.0  ;;  %vm1245_vm3 = vcmask 1040384  }
 0x3f0   : > { %v1229_v3 = vsel %vm1221_vm13, %v1423_v0, 0.0  ;;  %v1225_v4 = vmul.f32 %v1423_v0, %v1101_v1  ;;  %v1216_v5 = vsub.f32 %v1214_v60, %v1215_v62 }
 0x3f1   : > { %1230 = vadd.xlane.f32.xlu1 %v1229_v3 }
 0x3f2   : > { %v1226_v6 = vsel %vm1221_vm13, %v1225_v4, 0.0  ;;  %v1217_v7 = vadd.f32 %v1216_v5, %v1213_v2 }
 0x3f3   : > { %1227 = vadd.xlane.f32.xlu0 %v1226_v6 }
 0x3f4   : > { %v1222_v9 = vsel %vm1221_vm13, %v1217_v7, 0.0 }
 0x3f5   : > { %946 = vadd.xlane.f32.xlu1 %v945_v8 }
 0x3f7   : > { %1223 = vadd.xlane.f32.xlu0 %v1222_v9 }
 0x3fb   : > { %943 = vadd.xlane.f32.xlu0 %v942_v21 }
 0x47e   : > { %v1231_v12 = vpop.xlane.xlu1 %1230 }
 0x480   : > { %v1228_v11 = vpop.xlane.xlu0 %1227 }
 0x482   : > { %v947_v20 = vpop.xlane.xlu1 %946 }
 0x484   : > { %v1224_v13 = vpop.xlane.xlu0 %1223 }
 0x485   : > { %v1232_v14 = vsel %vm948_vm15, %v1224_v13, %v1228_v11 }
 0x486   : > { %v1233_v15 = vsel %vm950_vm0, %v1232_v14, %v1231_v12 }
 0x487   : > { %v1234_v16 = vsel %vm960_vm1, %v1233_v15, 0.0 }
 0x488   : > { %v1235_v18 = vrot.slane %v1234_v16, 4  ;;  %v944_v19 = vpop.xlane.xlu0 %943 }
 0x489   : > { %v949_v22 = vsel %vm948_vm15, %v940_v10, %v944_v19 }
 0x48a   : > { %v1236_v17 = vadd.f32 %v1235_v18, %v1234_v16  ;;  %v951_v24 = vsel %vm950_vm0, %v949_v22, %v947_v20 }
 0x48b   : > { %v953_v25 = vsel %vm952_vm2, %v951_v24, 0.0 }
 0x48c   : > { %v1237_v28 = vrot.slane %v1236_v17, 2  ;;  %v954_v30 = vrot.slane %v953_v25, 4 }
 0x48e   : > { %v1238_v31 = vadd.f32 %v1237_v28, %v1236_v17  ;;  %v955_v34 = vadd.f32 %v954_v30, %v953_v25 }
 0x490   : > { %v1239_v36 = vrot.slane %v1238_v31, 1  ;;  %v956_v37 = vrot.slane %v955_v34, 2 }
 0x492   : > { %v1240_v40 = vadd.f32 %v1239_v36, %v1238_v31  ;;  %v957_v23 = vadd.f32 %v956_v37, %v955_v34 }
 0x494   : > { %v1241_v26 = vsel %vm960_vm1, %v1240_v40, 0.0  ;;  %v958_v27 = vrot.slane %v957_v23, 1 }
 0x495   : > { %v1243_v32 = vrot.slane %v1241_v26, 7 }
 0x496   : > { %v959_v29 = vadd.f32 %v958_v27, %v957_v23 }
 0x498   : > { %v961_v33 = vsel %vm960_vm1, %v959_v29, 0.0 }
 0x499   : > { %v1246_v35 = vsel %vm1245_vm3, %v961_v33, %v1243_v32 }
 0x49a   : > { %1248 = vst.msk [vmem:[%s408_s30] sm:$0x3] %vm1247_vm4, %v1246_v35 }
 0x49b   : > { %1644 = shalt.err (!%p1641_p3)
}
 0x49c   : > { %s1645_s11 = scalar_lea.hbm %s2035_s21, 32  ;;  %s1649_s18 = scalar_lea.hbm %s2087_s10, 64 }
 0x49d   : > { %p1646_p4 = scmp.ne.s32.totalorder %s2035_s21, %s1645_s11  ;;  %p1650_p9 = scmp.lt.u32.totalorder %s2035_s21, %s2087_s10 }
 0x49e   : > { %p1651_p10 = scmp.lt.u32.totalorder %s1649_s18, %s1645_s11  ;;  %p1653_p12 = scmp.lt.u32.totalorder %s1645_s11, %s2035_s21 }
 0x49f   : > { %p1647_p7 = pnand %p1646_p4, %p1792_p5 }
 0x4a0   : > { %p1652_p11 = por %p1651_p10, %p1650_p9 }
 0x4a1   : > { %p1648_p8 = pneg %p1647_p7 }
 0x4a2   : > { %p1654_p13 = por %p1653_p12, %p1652_p11 }
 0x4a4   : > { %p1655_p0 = pnand %p1654_p13, %p1648_p8 }
 0x4a6   : > { %1658 = shalt.err (!%p1655_p0)
}
 0x4a7   : > { %1553 = dma.vmem_to_hbm [thread:$0]  (%p1792_p5), %s2037_s12, 32, %s2035_s21, %s1250_s17  }
 0x4a8 PF: > { %p1559_p1 = scmp.ge.s32.totalorder %s1693_s16, 2  ;;  %s1275_s26 = sand.u32 1, %s1681_s13  }
 0x4a9   : > { %s1276_s28 = scalar_lea.sflag [#allocation3], %s1275_s26 }
 0x4aa   : > { %p1556_p2 = pnand %p1559_p1, %p1796_p6 }
 0x4ac   : > { %1676 = dma.done.wait (!%p1556_p2), %s1276_s28, 32  }
 0x4ad   : > { %1678 = vsyncadd (!%p1556_p2), %s1276_s28, 4294967264  ;;  %p20_p3 = scmp.ge.s32.totalorder %s1779_s19, 4   ;;  %s2090_s13 = smov %s1685_s14 }
 0x4ae   : > { %s2091_s14 = smov %s1689_s15  ;;  %s2092_s15 = smov %s1790_s22 }
 0x4af   : > { %s2093_s16 = smov %s1779_s19  ;;  %22 = sbr.rel (!%p20_p3) target bundleno = 3 (0x3), region = 107 }
 0x4b6   :  { %1281 = vsyncpa [#allocation3], 1 }
 0x4b7   :  { %1283 = vsyncpa [#allocation3 + $0x1], 1 }

</bundles_post_ra>
